<compile_context>
chip_gen: v7x
topology: tpu7x:2x2x1
jax: 0.10.0
libtpu: 0.0.40
codegen_flags: <defaults>
</compile_context>

<pallas_src>
import functools

import jax
import jax.numpy as jnp
from jax.experimental import pallas as pl
from jax.experimental.pallas import tpu as pltpu


def _attention_kernel(x_ref, gamma_ref, beta_ref, wqkv_ref, wout_ref, o_ref,
                      qkv_scr, ctx_scr, *, heads, dim_head, eps):
    # x_ref block: (Bb, N, D) float32
    Bb, N, D = x_ref.shape
    inner = heads * dim_head
    rows = Bb * N

    # ---- LayerNorm over the embedding dim (f32: matches PyTorch biased variance) ----
    x2 = x_ref[...].reshape(rows, D)
    mean = jnp.mean(x2, axis=-1, keepdims=True)
    cent = x2 - mean
    var = jnp.mean(cent * cent, axis=-1, keepdims=True)
    xn = cent * jax.lax.rsqrt(var + eps)
    xn = xn * gamma_ref[...] + beta_ref[...]          # gamma/beta are (1, D)
    xn_b = xn.astype(jnp.bfloat16)                    # bf16 operands for the MXU

    # ---- ONE fused QKV projection for ALL heads ----
    # (rows, D) @ (D, 3*inner): full-width MXU pass, lane-dense store.  The softmax
    # scale is already folded into the q columns on the host.  f32 accumulation,
    # bf16 storage (scratch is consumed by bf16 matmuls below).
    qkv_scr[...] = jnp.dot(
        xn_b, wqkv_ref[...], preferred_element_type=jnp.float32
    ).astype(jnp.bfloat16)

    # ---- per-head attention ----
    # Only one head's (Bb, N, N) score block is live at a time; the per-head context
    # goes straight into the ctx scratch, so there is no value-carried accumulator.
    # TODO(synk): for heads >> 8 switch this to a lax.fori_loop / trailing grid axis,
    #             and for long N add a KV-tile online-softmax (flash-style) loop so
    #             the (Bb, N, N) scores never materialize.
    for h in range(heads):
        off = h * dim_head                                          # static offsets
        q = qkv_scr[:, off:off + dim_head].reshape(Bb, N, dim_head)
        k = qkv_scr[:, inner + off:inner + off + dim_head].reshape(Bb, N, dim_head)
        v = qkv_scr[:, 2 * inner + off:2 * inner + off + dim_head].reshape(Bb, N, dim_head)

        # Scores: contraction on the trailing axis of both operands — no k.T,
        # no XLU transpose, no relayout copy.
        s = jnp.einsum("bqd,bkd->bqk", q, k,
                       preferred_element_type=jnp.float32)          # (Bb, N, N) f32

        # Softmax in f32; approx reciprocal runs on the otherwise idle EUP slot.
        s = s - jnp.max(s, axis=-1, keepdims=True)
        p = jnp.exp(s)
        attn = p * pl.reciprocal(jnp.sum(p, axis=-1, keepdims=True), approx=True)

        out_h = jnp.einsum("bqk,bkd->bqd", attn.astype(jnp.bfloat16), v,
                           preferred_element_type=jnp.float32)      # (Bb, N, dh)
        ctx_scr[:, off:off + dim_head] = (
            out_h.reshape(rows, dim_head).astype(jnp.bfloat16))

    # ---- ONE fused output projection ----
    # (rows, inner) @ (inner, D): contraction K = inner (not dim_head), so the MXU
    # contraction rows are fully used; replaces `heads` accumulating K=16 matmuls.
    out = jnp.dot(ctx_scr[...], wout_ref[...], preferred_element_type=jnp.float32)
    o_ref[...] = out.reshape(Bb, N, D)


def _estimate_vmem_bytes(Bb, N, D, inner):
    """Rough resident-VMEM estimate for one grid step (blocks + scratch + live temps)."""
    f32, bf16 = 4, 2
    rows = Bb * N
    io_blocks = 2 * rows * D * f32 * 2                             # x + out, double-buffered
    weights = 2 * ((D * 3 * inner + inner * D) * bf16 + 2 * D * f32)  # still double-buffered
    scratch = rows * (3 * inner + inner) * bf16                    # qkv_scr + ctx_scr
    live = (rows * D * (f32 + bf16)                                # xn (f32 + bf16 copy)
            + rows * 3 * inner * f32                               # fused qkv result pre-cast
            + 2 * Bb * N * N * f32                                 # one head's scores + exp
            + rows * inner * f32                                   # per-head temporaries
            + rows * D * f32)                                      # output-projection result
    return io_blocks + weights + scratch + live


def _pick_block_b(B, N, D, inner, *, max_block_b=8,
                  vmem_budget=48 * 1024 * 1024):
    """Largest batch block that divides B and fits the VMEM budget, preferring
    (a) >= 2 grid steps (v7x has 2 TensorCores; also enables pipelining) and
    (b) Bb*N a multiple of 256 / 128 (v6e,v7x / v5e MXU row granularity)."""
    divisors = [bb for bb in range(min(B, max_block_b), 0, -1) if B % bb == 0]
    fitting = [bb for bb in divisors
               if _estimate_vmem_bytes(bb, N, D, inner) <= vmem_budget]
    if not fitting:
        return 1

    def pref(bb):
        rows = bb * N
        multi_step = 1 if B // bb >= 2 else 0
        align = 2 if rows % 256 == 0 else (1 if rows % 128 == 0 else 0)
        return (multi_step, align, bb)

    return max(fitting, key=pref)


def _vmem_limit_bytes(need):
    """Scoped-VMEM limit: actual need + headroom, capped below v7x's 64 MiB/TC."""
    cap = 56 * 1024 * 1024
    try:  # best-effort hardware query; never let it break compilation
        info = pltpu.get_tpu_info()
        phys = getattr(info, "vmem_capacity_bytes", None)
        if phys:
            cap = min(cap, int(phys) * 7 // 8)
    except Exception:
        pass
    return int(min(max(need * 5 // 4 + (2 << 20), 32 << 20), cap))


def attention_forward(x, gamma, beta, w_qkv, w_out, *, heads, dim_head,
                      eps=1e-5, max_block_b=8):
    """x: (B, N, D) float32; w_qkv: (D, 3*inner); w_out: (inner, D). Returns (B, N, D) f32."""
    B, N, D = x.shape
    inner = heads * dim_head
    scale = dim_head ** -0.5

    # ---- host-side weight preparation ----
    #  * fold the softmax scale into the q columns of the fused qkv weight,
    #  * cast matmul weights to bf16 (halves weight DMA, doubles MXU throughput);
    #    accumulation stays f32 inside the kernel.
    col_scale = jnp.concatenate(
        [jnp.full((inner,), scale, jnp.float32),
         jnp.ones((2 * inner,), jnp.float32)])
    w_qkv_b = (w_qkv.astype(jnp.float32) * col_scale[None, :]).astype(jnp.bfloat16)
    w_out_b = w_out.astype(jnp.bfloat16)
    gamma2 = gamma.reshape(1, D).astype(jnp.float32)
    beta2 = beta.reshape(1, D).astype(jnp.float32)

    Bb = _pick_block_b(B, N, D, inner, max_block_b=max_block_b)
    grid = (B // Bb,)
    vmem_limit = _vmem_limit_bytes(_estimate_vmem_bytes(Bb, N, D, inner))

    kernel = functools.partial(_attention_kernel, heads=heads,
                               dim_head=dim_head, eps=eps)

    flops_per_batch = (2 * N * D * 3 * inner           # fused qkv projection
                       + 4 * heads * N * N * dim_head  # QK^T and PV
                       + 2 * N * inner * D)            # output projection
    weight_bytes = (w_qkv_b.size + w_out_b.size) * 2 + (gamma2.size + beta2.size) * 4
    cost = pl.CostEstimate(
        flops=B * flops_per_batch,
        transcendentals=B * (heads * N * N + N),        # softmax exp + LN rsqrt
        # weights have constant index_maps -> fetched once, not once per grid step
        bytes_accessed=2 * x.size * 4 + weight_bytes)

    # TODO(synk): the weight inputs are DMA'd once (constant index_map) but still
    #             double-buffered; single-buffer them (pl.Buffered(1) / pl.ANY + one
    #             manual copy) when VMEM headroom matters (v7x, large D).
    # TODO(synk): for production D (multiple of 128) the output store is lane-dense;
    #             demo D=32 necessarily uses masked partial stores.
    return pl.pallas_call(
        kernel,
        out_shape=jax.ShapeDtypeStruct((B, N, D), jnp.float32),
        grid_spec=pltpu.PrefetchScalarGridSpec(
            num_scalar_prefetch=0,
            grid=grid,
            in_specs=[
                pl.BlockSpec((Bb, N, D), lambda b: (b, 0, 0)),       # x
                pl.BlockSpec((1, D), lambda b: (0, 0)),              # gamma
                pl.BlockSpec((1, D), lambda b: (0, 0)),              # beta
                pl.BlockSpec((D, 3 * inner), lambda b: (0, 0)),      # fused qkv weight (q scaled)
                pl.BlockSpec((inner, D), lambda b: (0, 0)),          # output weight
            ],
            out_specs=pl.BlockSpec((Bb, N, D), lambda b: (b, 0, 0)),
            scratch_shapes=[
                pltpu.VMEM((Bb * N, 3 * inner), jnp.bfloat16),       # fused q|k|v activations
                pltpu.VMEM((Bb * N, inner), jnp.bfloat16),           # concatenated head context
            ],
        ),
        compiler_params=pltpu.CompilerParams(
            dimension_semantics=("parallel",),
            vmem_limit_bytes=vmem_limit),
        cost_estimate=cost,
    )(x, gamma2, beta2, w_qkv_b, w_out_b)


def attention_reference(x, gamma, beta, w_qkv, w_out, *, heads, dim_head, eps=1e-5):
    """Pure-JAX f32 reference matching the PyTorch module (eval mode)."""
    B, N, D = x.shape
    inner = heads * dim_head
    scale = dim_head ** -0.5

    mean = jnp.mean(x, axis=-1, keepdims=True)
    var = jnp.mean((x - mean) ** 2, axis=-1, keepdims=True)
    xn = (x - mean) / jnp.sqrt(var + eps) * gamma + beta

    qkv = xn @ w_qkv                                   # (B, N, 3*inner)
    q, k, v = jnp.split(qkv, 3, axis=-1)               # each (B, N, inner)

    def to_heads(t):                                   # 'b n (h d) -> b h n d'
        return t.reshape(B, N, heads, dim_head).transpose(0, 2, 1, 3)

    q, k, v = map(to_heads, (q, k, v))
    dots = jnp.einsum("bhnd,bhmd->bhnm", q, k) * scale
    attn = jax.nn.softmax(dots, axis=-1)
    out = jnp.einsum("bhnm,bhmd->bhnd", attn, v)
    out = out.transpose(0, 2, 1, 3).reshape(B, N, inner)  # 'b h n d -> b n (h d)'
    return out @ w_out


if __name__ == "__main__":
    # Small shapes consistent with the module.
    B, N, D = 2, 8, 32
    heads, dim_head = 4, 16
    inner = heads * dim_head

    key = jax.random.PRNGKey(0)
    kx, kg, kb, kq, ko = jax.random.split(key, 5)

    x = jax.random.normal(kx, (B, N, D), dtype=jnp.float32)
    # Deterministic synthetic parameters (LayerNorm default init + random linears).
    gamma = jnp.ones((1, D), dtype=jnp.float32)
    beta = jnp.zeros((1, D), dtype=jnp.float32)
    w_qkv = jax.random.normal(kq, (D, 3 * inner), dtype=jnp.float32) * 0.05
    w_out = jax.random.normal(ko, (inner, D), dtype=jnp.float32) * 0.05
    # TODO(synk): dropout is identity here (eval mode); no RNG dropout in kernel.

    y = attention_forward(x, gamma, beta, w_qkv, w_out,
                          heads=heads, dim_head=dim_head)
    y = jax.block_until_ready(y)

    y_ref = attention_reference(x, gamma, beta, w_qkv, w_out,
                                heads=heads, dim_head=dim_head)
    # Looser tolerance: kernel uses bf16 matmul operands (f32 accumulation) and an
    # EUP-approximate reciprocal in the softmax normalization.
    assert jnp.allclose(y, y_ref, atol=2e-2, rtol=2e-2), (
        "mismatch vs reference; max abs err = "
        f"{float(jnp.max(jnp.abs(y - y_ref)))}")

    print("KERNEL_OK")
</pallas_src>

<mosaic_0001>
module attributes {stable_mosaic.version = 11 : i64} {
  func.func @_attention_kernel(%arg0: i32, %arg1: memref<1x8x32xf32, #tpu.memory_space<vmem>>, %arg2: memref<1x32xf32, #tpu.memory_space<vmem>>, %arg3: memref<1x32xf32, #tpu.memory_space<vmem>>, %arg4: memref<32x192xbf16, #tpu.memory_space<vmem>>, %arg5: memref<64x32xbf16, #tpu.memory_space<vmem>>, %arg6: memref<1x8x32xf32, #tpu.memory_space<vmem>>, %arg7: memref<8x192xbf16, #tpu.memory_space<vmem>>, %arg8: memref<8x64xbf16, #tpu.memory_space<vmem>>) attributes {dimension_semantics = [#tpu.dimension_semantics<parallel>], iteration_bounds = array<i64: 2>, scalar_prefetch = 0 : i64, scratch_operands = 2 : i64, tpu.core_type = #tpu.core_type<tc>, window_params = [{transform_indices = @transform_0, window_bounds = array<i64: 1, 8, 32>}, {pipeline_mode = #tpu.pipeline_mode<synchronous>, transform_indices = @transform_1, window_bounds = array<i64: 1, 32>}, {pipeline_mode = #tpu.pipeline_mode<synchronous>, transform_indices = @transform_2, window_bounds = array<i64: 1, 32>}, {pipeline_mode = #tpu.pipeline_mode<synchronous>, transform_indices = @transform_3, window_bounds = array<i64: 32, 192>}, {pipeline_mode = #tpu.pipeline_mode<synchronous>, transform_indices = @transform_4, window_bounds = array<i64: 64, 32>}, {transform_indices = @transform_5, window_bounds = array<i64: 1, 8, 32>}]} {
    %c0 = arith.constant 0 : index
    %c0_0 = arith.constant 0 : index
    %c0_1 = arith.constant 0 : index
    %0 = vector.load %arg1[%c0, %c0_0, %c0_1] : memref<1x8x32xf32, #tpu.memory_space<vmem>>, vector<1x8x32xf32>
    %1 = vector.shape_cast %0 : vector<1x8x32xf32> to vector<8x32xf32>
    %cst = arith.constant dense<0.000000e+00> : vector<8xf32>
    %2 = vector.multi_reduction <add>, %1, %cst [1] : vector<8x32xf32> to vector<8xf32>
    %3 = vector.shape_cast %2 : vector<8xf32> to vector<8x1xf32>
    %cst_2 = arith.constant 3.200000e+01 : f32
    %4 = vector.broadcast %cst_2 : f32 to vector<8x1xf32>
    %5 = arith.divf %3, %4 : vector<8x1xf32>
    %6 = vector.broadcast %5 : vector<8x1xf32> to vector<8x32xf32>
    %7 = arith.subf %1, %6 : vector<8x32xf32>
    %8 = arith.mulf %7, %7 : vector<8x32xf32>
    %cst_3 = arith.constant dense<0.000000e+00> : vector<8xf32>
    %9 = vector.multi_reduction <add>, %8, %cst_3 [1] : vector<8x32xf32> to vector<8xf32>
    %10 = vector.shape_cast %9 : vector<8xf32> to vector<8x1xf32>
    %cst_4 = arith.constant 3.200000e+01 : f32
    %11 = vector.broadcast %cst_4 : f32 to vector<8x1xf32>
    %12 = arith.divf %10, %11 : vector<8x1xf32>
    %cst_5 = arith.constant 9.99999974E-6 : f32
    %13 = vector.broadcast %cst_5 : f32 to vector<8x1xf32>
    %14 = arith.addf %12, %13 : vector<8x1xf32>
    %15 = math.rsqrt %14 : vector<8x1xf32>
    %16 = vector.broadcast %15 : vector<8x1xf32> to vector<8x32xf32>
    %17 = arith.mulf %7, %16 : vector<8x32xf32>
    %c0_6 = arith.constant 0 : index
    %c0_7 = arith.constant 0 : index
    %18 = vector.load %arg2[%c0_6, %c0_7] : memref<1x32xf32, #tpu.memory_space<vmem>>, vector<1x32xf32>
    %19 = vector.broadcast %18 : vector<1x32xf32> to vector<8x32xf32>
    %20 = arith.mulf %17, %19 : vector<8x32xf32>
    %c0_8 = arith.constant 0 : index
    %c0_9 = arith.constant 0 : index
    %21 = vector.load %arg3[%c0_8, %c0_9] : memref<1x32xf32, #tpu.memory_space<vmem>>, vector<1x32xf32>
    %22 = vector.broadcast %21 : vector<1x32xf32> to vector<8x32xf32>
    %23 = arith.addf %20, %22 : vector<8x32xf32>
    %24 = arith.truncf %23 : vector<8x32xf32> to vector<8x32xbf16>
    %c0_10 = arith.constant 0 : index
    %c0_11 = arith.constant 0 : index
    %25 = vector.load %arg4[%c0_10, %c0_11] : memref<32x192xbf16, #tpu.memory_space<vmem>>, vector<32x192xbf16>
    %cst_12 = arith.constant dense<0.000000e+00> : vector<8x192xf32>
    %26 = tpu.matmul %24, %25, %cst_12 {dimension_numbers = #tpu.dot_dimension_numbers<[1], [0], [0], [1], [0, 0, 1, 1], [], []>} : vector<8x32xbf16>, vector<32x192xbf16>, vector<8x192xf32> -> vector<8x192xf32>
    %27 = arith.truncf %26 : vector<8x192xf32> to vector<8x192xbf16>
    %c0_13 = arith.constant 0 : index
    %c0_14 = arith.constant 0 : index
    %28 = vector.load %arg7[%c0_13, %c0_14] : memref<8x192xbf16, #tpu.memory_space<vmem>>, vector<8x192xbf16>
    tpu.vector_store %arg7[%c0_13, %c0_14], %27 {strides = array<i32>} : memref<8x192xbf16, #tpu.memory_space<vmem>>, vector<8x192xbf16>,
    %c0_15 = arith.constant 0 : index
    %c0_16 = arith.constant 0 : index
    %29 = vector.load %arg7[%c0_15, %c0_16] : memref<8x192xbf16, #tpu.memory_space<vmem>>, vector<8x16xbf16>
    %30 = vector.shape_cast %29 : vector<8x16xbf16> to vector<1x8x16xbf16>
    %c0_17 = arith.constant 0 : index
    %c64 = arith.constant 64 : index
    %31 = vector.load %arg7[%c0_17, %c64] : memref<8x192xbf16, #tpu.memory_space<vmem>>, vector<8x16xbf16>
    %32 = vector.shape_cast %31 : vector<8x16xbf16> to vector<1x8x16xbf16>
    %c0_18 = arith.constant 0 : index
    %c128 = arith.constant 128 : index
    %33 = vector.load %arg7[%c0_18, %c128] : memref<8x192xbf16, #tpu.memory_space<vmem>>, vector<8x16xbf16>
    %34 = vector.shape_cast %33 : vector<8x16xbf16> to vector<1x8x16xbf16>
    "tpu.trace_start"() <{level = 10 : i32, message = "bqd,bkd->bqk"}> : () -> ()
    %cst_19 = arith.constant dense<0.000000e+00> : vector<1x8x8xf32>
    %35 = tpu.matmul %30, %32, %cst_19 {dimension_numbers = #tpu.dot_dimension_numbers<[2], [2], [1], [1], [0, 0, 0, 1, 1, 1], [0], [0]>} : vector<1x8x16xbf16>, vector<1x8x16xbf16>, vector<1x8x8xf32> -> vector<1x8x8xf32>
    "tpu.trace_stop"() : () -> ()
    %cst_20 = arith.constant dense<0xFF800000> : vector<1x8xf32>
    %36 = vector.multi_reduction <maximumf>, %35, %cst_20 [2] : vector<1x8x8xf32> to vector<1x8xf32>
    %37 = vector.shape_cast %36 : vector<1x8xf32> to vector<1x8x1xf32>
    %38 = vector.broadcast %37 : vector<1x8x1xf32> to vector<1x8x8xf32>
    %39 = arith.subf %35, %38 : vector<1x8x8xf32>
    %40 = math.exp %39 : vector<1x8x8xf32>
    %cst_21 = arith.constant dense<0.000000e+00> : vector<1x8xf32>
    %41 = vector.multi_reduction <add>, %40, %cst_21 [2] : vector<1x8x8xf32> to vector<1x8xf32>
    %42 = vector.shape_cast %41 : vector<1x8xf32> to vector<1x8x1xf32>
    %43 = tpu.reciprocal %42 {approx = true} : vector<1x8x1xf32> -> vector<1x8x1xf32>
    %44 = vector.broadcast %43 : vector<1x8x1xf32> to vector<1x8x8xf32>
    %45 = arith.mulf %40, %44 : vector<1x8x8xf32>
    %46 = arith.truncf %45 : vector<1x8x8xf32> to vector<1x8x8xbf16>
    "tpu.trace_start"() <{level = 10 : i32, message = "bqk,bkd->bqd"}> : () -> ()
    %cst_22 = arith.constant dense<0.000000e+00> : vector<1x8x16xf32>
    %47 = tpu.matmul %46, %34, %cst_22 {dimension_numbers = #tpu.dot_dimension_numbers<[2], [1], [1], [2], [0, 0, 0, 1, 1, 2], [0], [0]>} : vector<1x8x8xbf16>, vector<1x8x16xbf16>, vector<1x8x16xf32> -> vector<1x8x16xf32>
    "tpu.trace_stop"() : () -> ()
    %48 = vector.shape_cast %47 : vector<1x8x16xf32> to vector<8x16xf32>
    %49 = arith.truncf %48 : vector<8x16xf32> to vector<8x16xbf16>
    %c0_23 = arith.constant 0 : index
    %c0_24 = arith.constant 0 : index
    %50 = vector.load %arg8[%c0_23, %c0_24] : memref<8x64xbf16, #tpu.memory_space<vmem>>, vector<8x16xbf16>
    tpu.vector_store %arg8[%c0_23, %c0_24], %49 {strides = array<i32>} : memref<8x64xbf16, #tpu.memory_space<vmem>>, vector<8x16xbf16>,
    %c0_25 = arith.constant 0 : index
    %c16 = arith.constant 16 : index
    %51 = vector.load %arg7[%c0_25, %c16] : memref<8x192xbf16, #tpu.memory_space<vmem>>, vector<8x16xbf16>
    %52 = vector.shape_cast %51 : vector<8x16xbf16> to vector<1x8x16xbf16>
    %c0_26 = arith.constant 0 : index
    %c80 = arith.constant 80 : index
    %53 = vector.load %arg7[%c0_26, %c80] : memref<8x192xbf16, #tpu.memory_space<vmem>>, vector<8x16xbf16>
    %54 = vector.shape_cast %53 : vector<8x16xbf16> to vector<1x8x16xbf16>
    %c0_27 = arith.constant 0 : index
    %c144 = arith.constant 144 : index
    %55 = vector.load %arg7[%c0_27, %c144] : memref<8x192xbf16, #tpu.memory_space<vmem>>, vector<8x16xbf16>
    %56 = vector.shape_cast %55 : vector<8x16xbf16> to vector<1x8x16xbf16>
    "tpu.trace_start"() <{level = 10 : i32, message = "bqd,bkd->bqk"}> : () -> ()
    %cst_28 = arith.constant dense<0.000000e+00> : vector<1x8x8xf32>
    %57 = tpu.matmul %52, %54, %cst_28 {dimension_numbers = #tpu.dot_dimension_numbers<[2], [2], [1], [1], [0, 0, 0, 1, 1, 1], [0], [0]>} : vector<1x8x16xbf16>, vector<1x8x16xbf16>, vector<1x8x8xf32> -> vector<1x8x8xf32>
    "tpu.trace_stop"() : () -> ()
    %cst_29 = arith.constant dense<0xFF800000> : vector<1x8xf32>
    %58 = vector.multi_reduction <maximumf>, %57, %cst_29 [2] : vector<1x8x8xf32> to vector<1x8xf32>
    %59 = vector.shape_cast %58 : vector<1x8xf32> to vector<1x8x1xf32>
    %60 = vector.broadcast %59 : vector<1x8x1xf32> to vector<1x8x8xf32>
    %61 = arith.subf %57, %60 : vector<1x8x8xf32>
    %62 = math.exp %61 : vector<1x8x8xf32>
    %cst_30 = arith.constant dense<0.000000e+00> : vector<1x8xf32>
    %63 = vector.multi_reduction <add>, %62, %cst_30 [2] : vector<1x8x8xf32> to vector<1x8xf32>
    %64 = vector.shape_cast %63 : vector<1x8xf32> to vector<1x8x1xf32>
    %65 = tpu.reciprocal %64 {approx = true} : vector<1x8x1xf32> -> vector<1x8x1xf32>
    %66 = vector.broadcast %65 : vector<1x8x1xf32> to vector<1x8x8xf32>
    %67 = arith.mulf %62, %66 : vector<1x8x8xf32>
    %68 = arith.truncf %67 : vector<1x8x8xf32> to vector<1x8x8xbf16>
    "tpu.trace_start"() <{level = 10 : i32, message = "bqk,bkd->bqd"}> : () -> ()
    %cst_31 = arith.constant dense<0.000000e+00> : vector<1x8x16xf32>
    %69 = tpu.matmul %68, %56, %cst_31 {dimension_numbers = #tpu.dot_dimension_numbers<[2], [1], [1], [2], [0, 0, 0, 1, 1, 2], [0], [0]>} : vector<1x8x8xbf16>, vector<1x8x16xbf16>, vector<1x8x16xf32> -> vector<1x8x16xf32>
    "tpu.trace_stop"() : () -> ()
    %70 = vector.shape_cast %69 : vector<1x8x16xf32> to vector<8x16xf32>
    %71 = arith.truncf %70 : vector<8x16xf32> to vector<8x16xbf16>
    %c0_32 = arith.constant 0 : index
    %c16_33 = arith.constant 16 : index
    %72 = vector.load %arg8[%c0_32, %c16_33] : memref<8x64xbf16, #tpu.memory_space<vmem>>, vector<8x16xbf16>
    tpu.vector_store %arg8[%c0_32, %c16_33], %71 {strides = array<i32>} : memref<8x64xbf16, #tpu.memory_space<vmem>>, vector<8x16xbf16>,
    %c0_34 = arith.constant 0 : index
    %c32 = arith.constant 32 : index
    %73 = vector.load %arg7[%c0_34, %c32] : memref<8x192xbf16, #tpu.memory_space<vmem>>, vector<8x16xbf16>
    %74 = vector.shape_cast %73 : vector<8x16xbf16> to vector<1x8x16xbf16>
    %c0_35 = arith.constant 0 : index
    %c96 = arith.constant 96 : index
    %75 = vector.load %arg7[%c0_35, %c96] : memref<8x192xbf16, #tpu.memory_space<vmem>>, vector<8x16xbf16>
    %76 = vector.shape_cast %75 : vector<8x16xbf16> to vector<1x8x16xbf16>
    %c0_36 = arith.constant 0 : index
    %c160 = arith.constant 160 : index
    %77 = vector.load %arg7[%c0_36, %c160] : memref<8x192xbf16, #tpu.memory_space<vmem>>, vector<8x16xbf16>
    %78 = vector.shape_cast %77 : vector<8x16xbf16> to vector<1x8x16xbf16>
    "tpu.trace_start"() <{level = 10 : i32, message = "bqd,bkd->bqk"}> : () -> ()
    %cst_37 = arith.constant dense<0.000000e+00> : vector<1x8x8xf32>
    %79 = tpu.matmul %74, %76, %cst_37 {dimension_numbers = #tpu.dot_dimension_numbers<[2], [2], [1], [1], [0, 0, 0, 1, 1, 1], [0], [0]>} : vector<1x8x16xbf16>, vector<1x8x16xbf16>, vector<1x8x8xf32> -> vector<1x8x8xf32>
    "tpu.trace_stop"() : () -> ()
    %cst_38 = arith.constant dense<0xFF800000> : vector<1x8xf32>
    %80 = vector.multi_reduction <maximumf>, %79, %cst_38 [2] : vector<1x8x8xf32> to vector<1x8xf32>
    %81 = vector.shape_cast %80 : vector<1x8xf32> to vector<1x8x1xf32>
    %82 = vector.broadcast %81 : vector<1x8x1xf32> to vector<1x8x8xf32>
    %83 = arith.subf %79, %82 : vector<1x8x8xf32>
    %84 = math.exp %83 : vector<1x8x8xf32>
    %cst_39 = arith.constant dense<0.000000e+00> : vector<1x8xf32>
    %85 = vector.multi_reduction <add>, %84, %cst_39 [2] : vector<1x8x8xf32> to vector<1x8xf32>
    %86 = vector.shape_cast %85 : vector<1x8xf32> to vector<1x8x1xf32>
    %87 = tpu.reciprocal %86 {approx = true} : vector<1x8x1xf32> -> vector<1x8x1xf32>
    %88 = vector.broadcast %87 : vector<1x8x1xf32> to vector<1x8x8xf32>
    %89 = arith.mulf %84, %88 : vector<1x8x8xf32>
    %90 = arith.truncf %89 : vector<1x8x8xf32> to vector<1x8x8xbf16>
    "tpu.trace_start"() <{level = 10 : i32, message = "bqk,bkd->bqd"}> : () -> ()
    %cst_40 = arith.constant dense<0.000000e+00> : vector<1x8x16xf32>
    %91 = tpu.matmul %90, %78, %cst_40 {dimension_numbers = #tpu.dot_dimension_numbers<[2], [1], [1], [2], [0, 0, 0, 1, 1, 2], [0], [0]>} : vector<1x8x8xbf16>, vector<1x8x16xbf16>, vector<1x8x16xf32> -> vector<1x8x16xf32>
    "tpu.trace_stop"() : () -> ()
    %92 = vector.shape_cast %91 : vector<1x8x16xf32> to vector<8x16xf32>
    %93 = arith.truncf %92 : vector<8x16xf32> to vector<8x16xbf16>
    %c0_41 = arith.constant 0 : index
    %c32_42 = arith.constant 32 : index
    %94 = vector.load %arg8[%c0_41, %c32_42] : memref<8x64xbf16, #tpu.memory_space<vmem>>, vector<8x16xbf16>
    tpu.vector_store %arg8[%c0_41, %c32_42], %93 {strides = array<i32>} : memref<8x64xbf16, #tpu.memory_space<vmem>>, vector<8x16xbf16>,
    %c0_43 = arith.constant 0 : index
    %c48 = arith.constant 48 : index
    %95 = vector.load %arg7[%c0_43, %c48] : memref<8x192xbf16, #tpu.memory_space<vmem>>, vector<8x16xbf16>
    %96 = vector.shape_cast %95 : vector<8x16xbf16> to vector<1x8x16xbf16>
    %c0_44 = arith.constant 0 : index
    %c112 = arith.constant 112 : index
    %97 = vector.load %arg7[%c0_44, %c112] : memref<8x192xbf16, #tpu.memory_space<vmem>>, vector<8x16xbf16>
    %98 = vector.shape_cast %97 : vector<8x16xbf16> to vector<1x8x16xbf16>
    %c0_45 = arith.constant 0 : index
    %c176 = arith.constant 176 : index
    %99 = vector.load %arg7[%c0_45, %c176] : memref<8x192xbf16, #tpu.memory_space<vmem>>, vector<8x16xbf16>
    %100 = vector.shape_cast %99 : vector<8x16xbf16> to vector<1x8x16xbf16>
    "tpu.trace_start"() <{level = 10 : i32, message = "bqd,bkd->bqk"}> : () -> ()
    %cst_46 = arith.constant dense<0.000000e+00> : vector<1x8x8xf32>
    %101 = tpu.matmul %96, %98, %cst_46 {dimension_numbers = #tpu.dot_dimension_numbers<[2], [2], [1], [1], [0, 0, 0, 1, 1, 1], [0], [0]>} : vector<1x8x16xbf16>, vector<1x8x16xbf16>, vector<1x8x8xf32> -> vector<1x8x8xf32>
    "tpu.trace_stop"() : () -> ()
    %cst_47 = arith.constant dense<0xFF800000> : vector<1x8xf32>
    %102 = vector.multi_reduction <maximumf>, %101, %cst_47 [2] : vector<1x8x8xf32> to vector<1x8xf32>
    %103 = vector.shape_cast %102 : vector<1x8xf32> to vector<1x8x1xf32>
    %104 = vector.broadcast %103 : vector<1x8x1xf32> to vector<1x8x8xf32>
    %105 = arith.subf %101, %104 : vector<1x8x8xf32>
    %106 = math.exp %105 : vector<1x8x8xf32>
    %cst_48 = arith.constant dense<0.000000e+00> : vector<1x8xf32>
    %107 = vector.multi_reduction <add>, %106, %cst_48 [2] : vector<1x8x8xf32> to vector<1x8xf32>
    %108 = vector.shape_cast %107 : vector<1x8xf32> to vector<1x8x1xf32>
    %109 = tpu.reciprocal %108 {approx = true} : vector<1x8x1xf32> -> vector<1x8x1xf32>
    %110 = vector.broadcast %109 : vector<1x8x1xf32> to vector<1x8x8xf32>
    %111 = arith.mulf %106, %110 : vector<1x8x8xf32>
    %112 = arith.truncf %111 : vector<1x8x8xf32> to vector<1x8x8xbf16>
    "tpu.trace_start"() <{level = 10 : i32, message = "bqk,bkd->bqd"}> : () -> ()
    %cst_49 = arith.constant dense<0.000000e+00> : vector<1x8x16xf32>
    %113 = tpu.matmul %112, %100, %cst_49 {dimension_numbers = #tpu.dot_dimension_numbers<[2], [1], [1], [2], [0, 0, 0, 1, 1, 2], [0], [0]>} : vector<1x8x8xbf16>, vector<1x8x16xbf16>, vector<1x8x16xf32> -> vector<1x8x16xf32>
    "tpu.trace_stop"() : () -> ()
    %114 = vector.shape_cast %113 : vector<1x8x16xf32> to vector<8x16xf32>
    %115 = arith.truncf %114 : vector<8x16xf32> to vector<8x16xbf16>
    %c0_50 = arith.constant 0 : index
    %c48_51 = arith.constant 48 : index
    %116 = vector.load %arg8[%c0_50, %c48_51] : memref<8x64xbf16, #tpu.memory_space<vmem>>, vector<8x16xbf16>
    tpu.vector_store %arg8[%c0_50, %c48_51], %115 {strides = array<i32>} : memref<8x64xbf16, #tpu.memory_space<vmem>>, vector<8x16xbf16>,
    %c0_52 = arith.constant 0 : index
    %c0_53 = arith.constant 0 : index
    %117 = vector.load %arg8[%c0_52, %c0_53] : memref<8x64xbf16, #tpu.memory_space<vmem>>, vector<8x64xbf16>
    %c0_54 = arith.constant 0 : index
    %c0_55 = arith.constant 0 : index
    %118 = vector.load %arg5[%c0_54, %c0_55] : memref<64x32xbf16, #tpu.memory_space<vmem>>, vector<64x32xbf16>
    %cst_56 = arith.constant dense<0.000000e+00> : vector<8x32xf32>
    %119 = tpu.matmul %117, %118, %cst_56 {dimension_numbers = #tpu.dot_dimension_numbers<[1], [0], [0], [1], [0, 0, 1, 1], [], []>} : vector<8x64xbf16>, vector<64x32xbf16>, vector<8x32xf32> -> vector<8x32xf32>
    %120 = vector.shape_cast %119 : vector<8x32xf32> to vector<1x8x32xf32>
    %c0_57 = arith.constant 0 : index
    %c0_58 = arith.constant 0 : index
    %c0_59 = arith.constant 0 : index
    %121 = vector.load %arg6[%c0_57, %c0_58, %c0_59] : memref<1x8x32xf32, #tpu.memory_space<vmem>>, vector<1x8x32xf32>
    tpu.vector_store %arg6[%c0_57, %c0_58, %c0_59], %120 {strides = array<i32>} : memref<1x8x32xf32, #tpu.memory_space<vmem>>, vector<1x8x32xf32>,
    return
  }
  func.func @transform_0(%arg0: i32) -> (i32, i32, i32) {
    %c0_i32 = arith.constant 0 : i32
    %c0_i32_0 = arith.constant 0 : i32
    %c0_i32_1 = arith.constant 0 : i32
    return %arg0, %c0_i32, %c0_i32_0 : i32, i32, i32
  }
  func.func @transform_1(%arg0: i32) -> (i32, i32) {
    %c0_i32 = arith.constant 0 : i32
    %c0_i32_0 = arith.constant 0 : i32
    %c0_i32_1 = arith.constant 0 : i32
    return %c0_i32, %c0_i32_0 : i32, i32
  }
  func.func @transform_2(%arg0: i32) -> (i32, i32) {
    %c0_i32 = arith.constant 0 : i32
    %c0_i32_0 = arith.constant 0 : i32
    %c0_i32_1 = arith.constant 0 : i32
    return %c0_i32, %c0_i32_0 : i32, i32
  }
  func.func @transform_3(%arg0: i32) -> (i32, i32) {
    %c0_i32 = arith.constant 0 : i32
    %c0_i32_0 = arith.constant 0 : i32
    %c0_i32_1 = arith.constant 0 : i32
    return %c0_i32, %c0_i32_0 : i32, i32
  }
  func.func @transform_4(%arg0: i32) -> (i32, i32) {
    %c0_i32 = arith.constant 0 : i32
    %c0_i32_0 = arith.constant 0 : i32
    %c0_i32_1 = arith.constant 0 : i32
    return %c0_i32, %c0_i32_0 : i32, i32
  }
  func.func @transform_5(%arg0: i32) -> (i32, i32, i32) {
    %c0_i32 = arith.constant 0 : i32
    %c0_i32_0 = arith.constant 0 : i32
    %c0_i32_1 = arith.constant 0 : i32
    return %arg0, %c0_i32, %c0_i32_0 : i32, i32, i32
  }
}

</mosaic_0001>

<bundles_post_ra>
// kernel: tpu_custom_call.1
= control target key start
LH: loop header
LB: loop body
LE: loop exit
PB: predicated region body
PF: predicated region fallthrough
CT: control target
= control target key end

     0   :  { %10 = vsyncpa [#allocation5], 0  ;;  %s1498_s0 = inlined_call_operand.vmem [shape: f32[2,8,32], index: 0, kind: input, shape index: {}]   ;;  %s1499_s1 = inlined_call_operand.vmem [shape: f32[1,32], index: 1, kind: input, shape index: {}]   ;;  %s1500_s2 = inlined_call_operand.vmem [shape: f32[1,32], index: 2, kind: input, shape index: {}]   ;;  %s1501_s3 = inlined_call_operand.vmem [shape: bf16[32,192], index: 3, kind: input, shape index: {}]   ;;  %s1502_s4 = inlined_call_operand.vmem [shape: bf16[64,32], index: 4, kind: input, shape index: {}]   ;;  %s1503_s5 = inlined_call_operand.hbm [shape: f32[2,8,32], index: 5, kind: output, shape index: {}]  }
   0x1   :  { %12 = vsyncpa [#allocation5 + $0x1], 0  ;;  %s1297_s18 = smov 0   ;;  %s1299_s19 = smov 0  }
   0x2   :  { %s1301_s20 = smov 0   ;;  %s1303_s21 = smov 0  }
   0x3 LB: > { %s1318_s22 = sadd.s32 4294967295, %s1254_s21   ;;  %s982_s23 = sadd.s32 4294967294, %s1254_s21   ;;  %s1254_s21 = sphi %s1303_s21, %s1509_s21   ;;  %s1250_s20 = sphi %s1301_s20, %s1508_s20   ;;  %s1246_s19 = sphi %s1299_s19, %s1507_s19   ;;  %s1242_s18 = sphi %s1297_s18, %s1506_s18  }
   0x4   : > { %s1322_s24 = sadd.s32 1, %s1254_s21   ;;  %s135_s25 = sadd.s32 1, %s1250_s20 }
   0x5   : > { %s132_s26 = ssub.s32 %s1254_s21, %s1322_s24  ;;  %p145_p0 = scmp.ne.s32.totalorder %s1250_s20, %s1246_s19 }
   0x6   : > { %p133_p1 = scmp.eq.s32.totalorder %s132_s26, 0  ;;  %p146_p2 = scmp.eq.s32.totalorder %s1318_s22, 1 }
   0x7   : > { %p151_p3 = scmp.ne.s32.totalorder %s1246_s19, %s1242_s18  ;;  %p152_p4 = scmp.eq.s32.totalorder %s982_s23, 1 }
   0x8   : > { %s1333_s27 = scalar_select %p133_p1, %s1250_s20, %s135_s25  }
   0x9   : > { %p1335_p5 = por %p146_p2, %p145_p0  ;;  %p1339_p6 = por %p152_p4, %p151_p3 }
   0xa   : > { %p985_p7 = scmp.ge.s32.totalorder %s1254_s21, 1  ;;  %p189_p8 = scmp.lt.s32.totalorder %s1254_s21, 3 }
   0xc   : > { %p190_p9 = pnand %p985_p7, %p189_p8 }
   0xd   : > { %p216_p10 = scmp.lt.s32.totalorder (!%p190_p9), %s1318_s22, 1  ;;  %vm222_vm0 = vcmask (!%p190_p9), 261120   ;;  %v1157_v7 = vld [vmem:[%s1501_s3 + $0x4] ss:$8 sps:$4 sm:$0xff] (!%p190_p9)   ;;  %v1159_v8 = vld [vmem:[%s1501_s3] ss:$8 sps:$4 sm:$0xff] (!%p190_p9)  }
   0xe   : > { %193 = sbr.rel (%p190_p9) target bundleno = 1843 (0x733), region = 40  ;;  %v1160_v9 = vld [vmem:[%s1501_s3 + $0x14] ss:$8 sps:$4 sm:$0xff] (!%p190_p9)   ;;  %281 = vmatprep.subr.bf16.mxu0 (!%p190_p9), %v1157_v7  ;;  %v1256_v10 = vmov (!%p190_p9), 0   ;;  %v1162_v11 = vld [vmem:[%s1501_s3 + $0x10] ss:$8 sps:$4 sm:$0xff] (!%p190_p9)  }
   0xf   : > { %313 = vmatprep.mubr.bf16.mxu0 (!%p190_p9), %v1256_v10  ;;  %282 = vmatpush1.bf16.msra.mxu0 (!%p190_p9), %v1159_v8  ;;  %v988_v16 = vld [vmem:[%s1499_s1] ss:$0 sm:$0xff] (!%p190_p9)  ;;  %v1257_v22 = vmov (!%p190_p9), 0.0   ;;  %vm330_vm1 = vcmask (!%p190_p9), 1043456   ;;  %vm331_vm2 = vcmask (!%p190_p9), 523268   ;;  %vm1258_vm4 = vmmov (!%p190_p9), 0  }
  0x10   : > { %283 = vmatprep.subr.bf16.mxu0 (!%p190_p9), %v1160_v9  ;;  %v989_v18 = vld [vmem:[%s1500_s2] ss:$0 sm:$0xff] (!%p190_p9)  ;;  %1048 = vmatprep.subr.bf16.mxu1 (!%p190_p9), %v1257_v22  ;;  %vm332_vm3 = vmor (!%p190_p9), %vm331_vm2, %vm330_vm1  ;;  %s1260_s7 = smov (!%p190_p9), 64   ;;  %s1261_s8 = smov (!%p190_p9), 48   ;;  %vm341_vm5 = vcmask (!%p190_p9), 130048   ;;  %vm388_vm6 = vcmask (!%p190_p9), 64512  }
  0x11   : > { %1050 = vmatprep.mubr.msk.bf16.mxu1 (!%p190_p9), %vm1258_vm4, %v1257_v22  ;;  %s1263_s10 = smov (!%p190_p9), 96   ;;  %s1264_s11 = smov (!%p190_p9), 16   ;;  %vm448_vm7 = vcmask (!%p190_p9), 125952   ;;  %vm575_vm8 = vcmask (!%p190_p9), 257152   ;;  %vm702_vm9 = vcmask (!%p190_p9), 388352   ;;  %vm829_vm10 = vcmask (!%p190_p9), 519552  }
  0x12   : > { %s1265_s12 = smov (!%p190_p9), 80   ;;  %vm864_vm11 = vcmask (!%p190_p9), 523264  }
  0x13   : > { %284 = vmatpush1.bf16.msra.mxu0 (!%p190_p9), %v1162_v11 }
  0x14   : > { %1054 = vmatprep.subr.bf16.mxu0 (!%p190_p9), %v1257_v22 }
  0x15   : > { %s217_s30 = scalar_select %p216_p10, %s1318_s22, 1 }
  0x17   : > { %s987_s6 = sshll.u32 %s217_s30, 3  ;;  %s213_s30 = sand.u32 1, %s1246_s19  }
  0x18   : > { %s219_s9 = scalar_lea.vmem %s1498_s0, %s987_s6  ;;  %s1259_s6 = smov 112  }
  0x19   : > { %v221_v0 = vld [vmem:[%s219_s9] sm:$0xff]  ;;  %s1262_s9 = smov 32   ;;  %s910_s13 = scalar_lea.sflag [#allocation5], %s213_s30 }
  0x1a   : > { %v223_v1 = vsel %vm222_vm0, %v221_v0, 0.0 }
  0x1b   : > { %224 = vadd.xlane.f32.xlu0 %v223_v1 }
  0xa8   : > { %v225_v2 = vpop.xlane.xlu0 %224 }
  0xa9   : > { %v227_v3 = vmul.f32 0.03125, %v225_v2 }
  0xab   : > { %v228_v4 = vsub.f32 %v221_v0, %v227_v3 }
  0xad   : > { %v229_v5 = vmul.f32 %v228_v4, %v228_v4 }
  0xaf   : > { %v230_v6 = vsel %vm222_vm0, %v229_v5, 0.0 }
  0xb0   : > { %231 = vadd.xlane.f32.xlu0 %v230_v6 }
 0x13d   : > { %v232_v12 = vpop.xlane.xlu0 %231 }
 0x13e   : > { %v233_v13 = vmul.f32 0.03125, %v232_v12 }
 0x140   : > { %v234_v14 = vadd.f32 1e-05, %v233_v13 }
 0x142   : > { %1174 = vrsqrt.f32 %v234_v14 }
 0x14c   : > { %v1175_v15 = vpop.eup %1174 }
 0x14d   : > { %v236_v17 = vmul.f32 %v1175_v15, %v228_v4 }
 0x14f   : > { %v244_v19 = vmul.f32 %v988_v16, %v236_v17 }
 0x151   : > { %v252_v20 = vadd.f32 %v989_v18, %v244_v19 }
 0x153   : > { %v253_v21 = vpack.c.bf16 %v252_v20, %v252_v20 }
 0x155   : > { %994 = vmatmul.mubr.msk.bf16.vlgmr.msra.gmra.mrb[0].mxu0 %vm222_vm0, %v253_v21 }
 0x156   : > { %1056 = vmatprep.mubr.msk.bf16.mxu0 %vm1258_vm4, %v1257_v22 }
 0x228   : > { %v315_v23 = vpop.f32.mrb[0].mxu0 }
 0x229   : > { %v317_v24 = vpop.f32.mrb[1].mxu0 }
 0x22a   : > { %v1023_v25 = vpack.c.bf16 %v317_v24, %v315_v23  ;;  %v319_v26 = vpop.f32.mrb[2].mxu0 }
 0x22b   : > { %v320_v27 = vpop.f32.mrb[3].mxu0 }
 0x22c   : > { %333 = vst.msk [vmem:[#allocation2] sm:$0xff] %vm332_vm3, %v1023_v25 }
 0x233   : > { %v335_v28 = vld [vmem:[#allocation2 + $0x4] sm:$0xf]  ;;  %v1163_v29 = vld [vmem:[#allocation2] ss:$0 sps:$4 sm:$0xff]  }
 0x234   : > { %v405_v30 = vsel %vm330_vm1, %v335_v28, 0  ;;  %v334_v31 = vld [vmem:[#allocation2] sm:$0xf]  ;;  %455 = vrot.lane.b32.xlu0 %v1163_v29, %s1259_s6  ;;  %v1167_v15 = vld [vmem:[#allocation2 + $0x4] ss:$0 sps:$4 sm:$0xff]  }
 0x235   : > { %1055 = vmatpush3.bf16.msra.mxu0 %v405_v30  ;;  %v996_v32 = vcombine.low %v334_v31, %v334_v31  ;;  %v1165_v33 = vld [vmem:[#allocation2] ss:$0 sps:$4 sm:$0xff]   ;;  %v1168_v21 = vld [vmem:[#allocation2 + $0x4] ss:$0 sps:$4 sm:$0xff]  }
 0x236   : > { %1066 = vmatprep.subr.bf16.mxu0 %v1257_v22  ;;  %v1166_v34 = vld [vmem:[#allocation2] ss:$0 sps:$4 sm:$0xff]   ;;  %v1169_v25 = vld [vmem:[#allocation2 + $0x4] ss:$0 sps:$4 sm:$0xff]  }
 0x237   : > { %339 = vrot.lane.b32.xlu1 %v996_v32, %s1260_s7  ;;  %s1020_s7 = sshll.u32 %s1318_s22, 7  ;;  %s1266_s22 = smov [#allocation4]  }
 0x238   : > { %s1196_s15 = sshll.u32 %s1266_s22, 4  ;;  %s1197_s15 = int_to_ptr.vmem [resolvable:$false] %s1196_s15 }
 0x239   : > { %s1198_s16 = scalar_lea.vmem %s1197_s15, 256 }
 0x23b   : > { %457 = vrot.lane.b32.xlu1 %v1163_v29, %s1261_s8 }
 0x23f   : > { %584 = vrot.lane.b32.xlu1 %v1165_v33, %s1262_s9 }
 0x243   : > { %582 = vrot.lane.b32.xlu1 %v1165_v33, %s1263_s10 }
 0x247   : > { %711 = vrot.lane.b32.xlu1 %v1166_v34, %s1264_s11 }
 0x24b   : > { %709 = vrot.lane.b32.xlu1 %v1166_v34, %s1265_s12 }
 0x2a6   : > { %v456_v40 = vpop.permute.xlu0 %455 }
 0x2a9   : > { %v340_v35 = vpop.permute.xlu1 %339 }
 0x2aa   : > { %v346_v36 = vsel %vm341_vm5, %v340_v35, 0 }
 0x2ab   : > { %1049 = vmatpush3.bf16.xpose.msra.mxu1 %v346_v36 }
 0x2ac   : > { %1060 = vmatprep.subr.bf16.mxu1 %v1257_v22 }
 0x2ad   : > { %v458_v37 = vpop.permute.xlu1 %457 }
 0x2ae   : > { %v463_v38 = vsel %vm341_vm5, %v458_v37, 0 }
 0x2b1   : > { %v585_v39 = vpop.permute.xlu1 %584 }
 0x2b2   : > { %1051 = vmatmul.mubr.msk.bf16.vlgmr.msra.gmra.mrb[0].mxu1 %vm341_vm5, %v334_v31  ;;  %v590_v42 = vsel %vm341_vm5, %v585_v39, 0 }
 0x2b3   : > { %1061 = vmatpush3.bf16.xpose.msra.mxu1 %v463_v38  ;;  %1062 = vmatprep.mubr.msk.bf16.mxu1 %vm1258_vm4, %v1257_v22 }
 0x2b4   : > { %1072 = vmatprep.subr.bf16.mxu1 %v1257_v22 }
 0x2b5   : > { %v583_v41 = vpop.permute.xlu1 %582 }
 0x2b9   : > { %v712_v43 = vpop.permute.xlu1 %711 }
 0x2ba   : > { %1063 = vmatmul.mubr.msk.bf16.vlgmr.msra.gmra.mrb[4].mxu1 %vm341_vm5, %v456_v40  ;;  %v717_v44 = vsel %vm341_vm5, %v712_v43, 0 }
 0x2bb   : > { %1073 = vmatpush3.bf16.xpose.msra.mxu1 %v590_v42  ;;  %1074 = vmatprep.mubr.msk.bf16.mxu1 %vm1258_vm4, %v1257_v22 }
 0x2bc   : > { %1084 = vmatprep.subr.bf16.mxu1 %v1257_v22 }
 0x2bd   : > { %v710_v45 = vpop.permute.xlu1 %709 }
 0x2c2   : > { %1075 = vmatmul.mubr.msk.bf16.vlgmr.msra.gmra.mrb[8].mxu1 %vm341_vm5, %v583_v41 }
 0x2c3   : > { %1085 = vmatpush3.bf16.xpose.msra.mxu1 %v717_v44  ;;  %1086 = vmatprep.mubr.msk.bf16.mxu1 %vm1258_vm4, %v1257_v22 }
 0x2c4   : > { %1096 = vmatprep.subr.bf16.mxu1 %v1257_v22 }
 0x2ca   : > { %1087 = vmatmul.mubr.msk.bf16.vlgmr.msra.gmra.mrb[12].mxu1 %vm341_vm5, %v710_v45 }
 0x2cb   : > { %1104 = vmatprep.mubr.msk.bf16.mxu1 %vm1258_vm4, %v1257_v22 }
 0x385   : > { %v382_v46 = vpop.f32.mrb[0].mxu1 }
 0x386   : > { %v1052_v47 = vpop.f32.mrb[1].mxu1  ;;  %v389_v48 = vsel %vm388_vm6, %v382_v46, -inf }
 0x387   : > { %390 = vmax.xlane.f32.xlu1 %v389_v48  ;;  %v385_v49 = vpop.f32.mrb[2].mxu1 }
 0x388   : > { %v1053_v50 = vpop.f32.mrb[3].mxu1 }
 0x38d   : > { %v499_v51 = vpop.f32.mrb[4].mxu1 }
 0x38e   : > { %v1064_v52 = vpop.f32.mrb[5].mxu1  ;;  %v505_v53 = vsel %vm388_vm6, %v499_v51, -inf }
 0x38f   : > { %506 = vmax.xlane.f32.xlu0 %v505_v53  ;;  %v502_v54 = vpop.f32.mrb[6].mxu1 }
 0x390   : > { %v1065_v55 = vpop.f32.mrb[7].mxu1 }
 0x395   : > { %v626_v56 = vpop.f32.mrb[8].mxu1 }
 0x396   : > { %v1076_v57 = vpop.f32.mrb[9].mxu1  ;;  %v632_v58 = vsel %vm388_vm6, %v626_v56, -inf }
 0x397   : > { %633 = vmax.xlane.f32.xlu1 %v632_v58  ;;  %v629_v59 = vpop.f32.mrb[10].mxu1  ;;  %v1170_v58 = vld [vmem:[%s1502_s4] sm:$0xff]  }
 0x398   : > { %v1077_v60 = vpop.f32.mrb[11].mxu1  ;;  %1097 = vmatpush3.bf16.msra.mxu1 %v1170_v58  ;;  %v1171_v59 = vld [vmem:[%s1502_s4 + $0x8] sm:$0xff]  }
 0x399   : > { %1098 = vmatprep.subr.bf16.mxu1 %v1257_v22  ;;  %v1172_v60 = vld [vmem:[%s1502_s4 + $0x10] sm:$0xff]  }
 0x39c   : > { %1099 = vmatpush3.bf16.msra.mxu1 %v1171_v59 }
 0x39d   : > { %v753_v61 = vpop.f32.mrb[12].mxu1  ;;  %1100 = vmatprep.subr.bf16.mxu1 %v1257_v22 }
 0x39e   : > { %v1088_v62 = vpop.f32.mrb[13].mxu1  ;;  %v759_v63 = vsel %vm388_vm6, %v753_v61, -inf }
 0x39f   : > { %760 = vmax.xlane.f32.xlu0 %v759_v63  ;;  %v756_v0 = vpop.f32.mrb[14].mxu1  ;;  %v1173_v62 = vld [vmem:[%s1502_s4 + $0x18] sm:$0xff]  }
 0x3a0   : > { %v1089_v1 = vpop.f32.mrb[15].mxu1  ;;  %1101 = vmatpush3.bf16.msra.mxu1 %v1172_v60 }
 0x3a1   : > { %1102 = vmatprep.subr.bf16.mxu1 %v1257_v22 }
 0x3a4   : > { %1103 = vmatpush3.bf16.msra.mxu1 %v1173_v62 }
 0x414   : > { %v391_v2 = vpop.xlane.xlu1 %390 }
 0x415   : > { %v392_v3 = vsub.f32 %v382_v46, %v391_v2 }
 0x417   : > { %v393_v4 = vmul.f32 1.442695, %v392_v3 }
 0x419   : > { %1176 = vpow2.f32 %v393_v4 }
 0x41c   : > { %v507_v5 = vpop.xlane.xlu0 %506 }
 0x41d   : > { %v508_v6 = vsub.f32 %v499_v51, %v507_v5 }
 0x41f   : > { %v509_v7 = vmul.f32 1.442695, %v508_v6 }
 0x421   : > { %1178 = vpow2.f32 %v509_v7 }
 0x423   : > { %v1177_v8 = vpop.eup %1176 }
 0x424   : > { %v395_v9 = vsel %vm388_vm6, %v1177_v8, 0.0  ;;  %v634_v18 = vpop.xlane.xlu1 %633 }
 0x425   : > { %396 = vadd.xlane.f32.xlu1 %v395_v9  ;;  %v635_v19 = vsub.f32 %v626_v56, %v634_v18 }
 0x427   : > { %v636_v20 = vmul.f32 1.442695, %v635_v19 }
 0x42b   : > { %v1179_v10 = vpop.eup %1178 }
 0x42c   : > { %v761_v11 = vpop.xlane.xlu0 %760  ;;  %v511_v12 = vsel %vm388_vm6, %v1179_v10, 0.0 }
 0x42d   : > { %v762_v13 = vsub.f32 %v753_v61, %v761_v11  ;;  %512 = vadd.xlane.f32.xlu0 %v511_v12 }
 0x42f   : > { %v763_v14 = vmul.f32 1.442695, %v762_v13 }
 0x431   : > { %1180 = vpow2.f32 %v763_v14 }
 0x432   : > { %1182 = vpow2.f32 %v636_v20 }
 0x436   : > { %520 = vrot.lane.b32.xlu1 %v1167_v15, %s1259_s6  ;;  %s986_s6 = sshll.u32 %s213_s30, 3 }
 0x43b   : > { %v1181_v16 = vpop.eup %1180 }
 0x43c   : > { %v765_v17 = vsel %vm388_vm6, %v1181_v16, 0.0  ;;  %v1183_v23 = vpop.eup %1182 }
 0x43d   : > { %766 = vadd.xlane.f32.xlu0 %v765_v17  ;;  %v638_v24 = vsel %vm388_vm6, %v1183_v23, 0.0 }
 0x453   : > { %647 = vrot.lane.b32.xlu0 %v1168_v21, %s1263_s10 }
 0x45a   : > { %639 = vadd.xlane.f32.xlu1 %v638_v24 }
 0x46b   : > { %774 = vrot.lane.b32.xlu1 %v1169_v25, %s1265_s12  ;;  %s1455_s12 = scalar_lea.hbm %s1503_s5, %s1020_s7 }
 0x4b2   : > { %v397_v26 = vpop.xlane.xlu1 %396 }
 0x4b3   : > { %1184 = vrcp.f32 %v397_v26 }
 0x4b6   : > { %v521_v30 = vpop.permute.xlu1 %520 }
 0x4b7   : > { %v526_v32 = vsel %vm330_vm1, %v521_v30, 0 }
 0x4ba   : > { %v513_v27 = vpop.xlane.xlu0 %512 }
 0x4bb   : > { %1186 = vrcp.f32 %v513_v27 }
 0x4bd   : > { %v1185_v28 = vpop.eup %1184 }
 0x4be   : > { %v399_v29 = vmul.f32 %v1185_v28, %v1177_v8 }
 0x4c0   : > { %v400_v31 = vpack.c.bf16 %v399_v29, %v399_v29 }
 0x4c2   : > { %1057 = vmatmul.mubr.msk.bf16.vlgmr.msra.gmra.mrb[4].mxu0 %vm388_vm6, %v400_v31 }
 0x4c3   : > { %1067 = vmatpush3.bf16.msra.mxu0 %v526_v32  ;;  %1068 = vmatprep.mubr.msk.bf16.mxu0 %vm1258_vm4, %v1257_v22 }
 0x4c4   : > { %1078 = vmatprep.subr.bf16.mxu0 %v1257_v22 }
 0x4c5   : > { %v1187_v33 = vpop.eup %1186 }
 0x4c6   : > { %v515_v34 = vmul.f32 %v1187_v33, %v1179_v10 }
 0x4c8   : > { %v516_v35 = vpack.c.bf16 %v515_v34, %v515_v34 }
 0x4ca   : > { %v767_v36 = vpop.xlane.xlu0 %766  ;;  %1069 = vmatmul.mubr.msk.bf16.vlgmr.msra.gmra.mrb[8].mxu0 %vm388_vm6, %v516_v35 }
 0x4cb   : > { %1080 = vmatprep.mubr.msk.bf16.mxu0 %vm1258_vm4, %v1257_v22 }
 0x4ce   : > { %v648_v37 = vpop.permute.xlu0 %647 }
 0x4cf   : > { %v653_v38 = vsel %vm330_vm1, %v648_v37, 0 }
 0x4d0   : > { %1079 = vmatpush3.bf16.msra.mxu0 %v653_v38 }
 0x4d1   : > { %1090 = vmatprep.subr.bf16.mxu0 %v1257_v22 }
 0x4e7   : > { %v640_v39 = vpop.xlane.xlu1 %639 }
 0x4e8   : > { %1188 = vrcp.f32 %v640_v39 }
 0x4e9   : > { %1190 = vrcp.f32 %v767_v36 }
 0x4eb   : > { %v775_v42 = vpop.permute.xlu1 %774 }
 0x4ec   : > { %v780_v45 = vsel %vm330_vm1, %v775_v42, 0 }
 0x4f2   : > { %v1189_v40 = vpop.eup %1188 }
 0x4f3   : > { %v642_v41 = vmul.f32 %v1189_v40, %v1183_v23  ;;  %v1191_v44 = vpop.eup %1190 }
 0x4f4   : > { %v769_v46 = vmul.f32 %v1191_v44, %v1181_v16 }
 0x4f5   : > { %v643_v43 = vpack.c.bf16 %v642_v41, %v642_v41 }
 0x4f6   : > { %v770_v47 = vpack.c.bf16 %v769_v46, %v769_v46 }
 0x4f7   : > { %1081 = vmatmul.mubr.msk.bf16.vlgmr.msra.gmra.mrb[12].mxu0 %vm388_vm6, %v643_v43 }
 0x4f8   : > { %1091 = vmatpush3.bf16.msra.mxu0 %v780_v45  ;;  %1092 = vmatprep.mubr.msk.bf16.mxu0 %vm1258_vm4, %v1257_v22 }
 0x4ff   : > { %1093 = vmatmul.mubr.msk.bf16.vlgmr.msra.gmra.mrb[16].mxu0 %vm388_vm6, %v770_v47 }
 0x595   : > { %v441_v48 = vpop.f32.mrb[4].mxu0 }
 0x596   : > { %v447_v49 = vpack.c.bf16 %v441_v48, %v441_v48  ;;  %v1058_v50 = vpop.f32.mrb[5].mxu0 }
 0x597   : > { %v444_v51 = vpop.f32.mrb[6].mxu0 }
 0x598   : > { %449 = vst.msk [vmem:[#allocation3] sm:$0xf] %vm448_vm7, %v447_v49  ;;  %v1059_v52 = vpop.f32.mrb[7].mxu0 }
 0x59d   : > { %v562_v53 = vpop.f32.mrb[8].mxu0 }
 0x59e   : > { %v1024_v54 = vpack.c.bf16 %v562_v53, %v562_v53  ;;  %v1070_v55 = vpop.f32.mrb[9].mxu0 }
 0x59f   : > { %v565_v56 = vpop.f32.mrb[10].mxu0 }
 0x5a0   : > { %572 = vrot.lane.b32.xlu1 %v1024_v54, %s1264_s11  ;;  %v1071_v57 = vpop.f32.mrb[11].mxu0 }
 0x5ca   : > { %v689_v61 = vpop.f32.mrb[12].mxu0 }
 0x5cb   : > { %v1025_v63 = vpack.c.bf16 %v689_v61, %v689_v61  ;;  %v1082_v0 = vpop.f32.mrb[13].mxu0 }
 0x5cc   : > { %v692_v1 = vpop.f32.mrb[14].mxu0 }
 0x5cd   : > { %699 = vrot.lane.b32.xlu0 %v1025_v63, %s1262_s9  ;;  %v1083_v2 = vpop.f32.mrb[15].mxu0  ;;  %s215_s9 = scalar_lea.vmem [#allocation4], %s986_s6 }
 0x5d2   : > { %v816_v3 = vpop.f32.mrb[16].mxu0 }
 0x5d3   : > { %v1026_v4 = vpack.c.bf16 %v816_v3, %v816_v3  ;;  %v1094_v5 = vpop.f32.mrb[17].mxu0 }
 0x5d4   : > { %v819_v6 = vpop.f32.mrb[18].mxu0 }
 0x5d5   : > { %826 = vrot.lane.b32.xlu1 %v1026_v4, %s1261_s8  ;;  %v1095_v7 = vpop.f32.mrb[19].mxu0  ;;  %s923_s8 = sshll.u32 %s215_s9, 4  ;;  %s1457_s8 = int_to_ptr.vmem [resolvable:$true] %s923_s8 }
 0x5d6   : > { %s1192_s14 = scalar_lea.vmem %s1457_s8, 128  ;;  %p1199_p0 = scmp.lt.s32.totalorder %s1457_s8, %s1197_s15 }
 0x5d7   : > { %p1193_p11 = scmp.ne.s32.totalorder %s1457_s8, %s1192_s14  ;;  %p1200_p1 = scmp.lt.s32.totalorder %s1198_s16, %s1192_s14 }
 0x5d9   : > { %p1194_p12 = pnand %p1193_p11, %p1335_p5  ;;  %p1201_p2 = por %p1200_p1, %p1199_p0 }
 0x5db   : > { %p1195_p13 = pneg %p1194_p12 }
 0x5dd   : > { %p1202_p3 = pnand %p1201_p2, %p1195_p13 }
 0x612   : > { %v573_v8 = vpop.permute.xlu1 %572 }
 0x613   : > { %576 = vst.msk [vmem:[#allocation3] sm:$0xf] %vm575_vm8, %v573_v8 }
 0x63f   : > { %v700_v9 = vpop.permute.xlu0 %699 }
 0x640   : > { %703 = vst.msk [vmem:[#allocation3] sm:$0xf] %vm702_vm9, %v700_v9 }
 0x647   : > { %v827_v22 = vpop.permute.xlu1 %826 }
 0x648   : > { %830 = vst.msk [vmem:[#allocation3] sm:$0xf] %vm829_vm10, %v827_v22 }
 0x64f   : > { %v831_v10 = vld [vmem:[#allocation3] sm:$0xf] }
 0x650   : > { %1105 = vmatmul.mubr.msk.bf16.vlgmr.msra.gmra.mrb[16].mxu1 %vm864_vm11, %v831_v10 }
 0x723   : > { %v902_v11 = vpop.f32.mrb[16].mxu1 }
 0x724   : > { %908 = vst.msk [vmem:[%s215_s9] sm:$0xff] %vm222_vm0, %v902_v11  ;;  %v1106_v12 = vpop.f32.mrb[17].mxu1 }
 0x725   : > { %v905_v13 = vpop.f32.mrb[18].mxu1 }
 0x726   : > { %1205 = shalt.err (!%p1202_p3)
}
 0x727   : > { %s1206_s17 = scalar_lea.hbm %s1455_s12, 128  ;;  %s1210_s26 = scalar_lea.hbm %s1503_s5, 256 }
 0x728   : > { %p1207_p4 = scmp.ne.s32.totalorder %s1455_s12, %s1206_s17  ;;  %p1211_p9 = scmp.lt.u32.totalorder %s1455_s12, %s1503_s5 }
 0x729   : > { %p1212_p10 = scmp.lt.u32.totalorder %s1210_s26, %s1206_s17  ;;  %p1214_p12 = scmp.lt.u32.totalorder %s1206_s17, %s1455_s12 }
 0x72a   : > { %p1208_p7 = pnand %p1207_p4, %p1335_p5 }
 0x72b   : > { %p1213_p11 = por %p1212_p10, %p1211_p9 }
 0x72c   : > { %p1209_p8 = pneg %p1208_p7 }
 0x72d   : > { %p1215_p13 = por %p1214_p12, %p1213_p11 }
 0x72f   : > { %p1216_p0 = pnand %p1215_p13, %p1209_p8 }
 0x731   : > { %1219 = shalt.err (!%p1216_p0)
}
 0x732   : > { %1108 = dma.vmem_to_hbm [thread:$0]  (%p1335_p5), %s1457_s8, 128, %s1455_s12, %s910_s13   ;;  %v1107_v14 = vpop.f32.mrb[19].mxu1 }
 0x733 PF: > { %p1114_p1 = scmp.ge.s32.totalorder %s1254_s21, 2  ;;  %s935_s7 = sand.u32 1, %s1242_s18  }
 0x734   : > { %s936_s9 = scalar_lea.sflag [#allocation5], %s935_s7 }
 0x735   : > { %p1111_p2 = pnand %p1114_p1, %p1339_p6 }
 0x737   : > { %1237 = dma.done.wait (!%p1111_p2), %s936_s9, 128  }
 0x738   : > { %1239 = vsyncadd (!%p1111_p2), %s936_s9, 4294967168  ;;  %p15_p3 = scmp.ge.s32.totalorder %s1322_s24, 4   ;;  %s1506_s18 = smov %s1246_s19 }
 0x739   : > { %s1507_s19 = smov %s1250_s20  ;;  %s1508_s20 = smov %s1333_s27 }
 0x73a   : > { %s1509_s21 = smov %s1322_s24  ;;  %17 = sbr.rel (!%p15_p3) target bundleno = 3 (0x3), region = 75 }
 0x741   :  { %941 = vsyncpa [#allocation5], 1 }
 0x742   :  { %943 = vsyncpa [#allocation5 + $0x1], 1 }

</bundles_post_ra>
